<compile_context>
chip_gen: v5e
topology: v5e:2x2
jax: 0.10.0
libtpu: 0.0.40
codegen_flags: <defaults>
</compile_context>

<pallas_src>
import jax
import jax.numpy as jnp
from jax.experimental import pallas as pl
from jax.experimental.pallas import tpu as pltpu


def _make_prop_kernel(W, HW, horizontal):
    """Kernel over blocks: x,y (bb, cc, HW) -> ox,oy (bb, 3, cc, HW)."""
    w_pow2 = (W & (W - 1)) == 0

    def kernel(x_ref, y_ref, ox_ref, oy_ref):
        x = x_ref[...]            # (bb, cc, HW)
        y = y_ref[...]

        # Boundary masks along the fused H*W lane axis, built once at
        # (1, 1, HW) and broadcast by jnp.where (sublane broadcast is cheap).
        lane = jax.lax.broadcasted_iota(jnp.int32, (1, 1, HW), 2)
        if horizontal:
            w_idx = (lane & (W - 1)) if w_pow2 else (lane % W)
            first_mask = w_idx == 0            # w == 0   -> zero fill
            last_mask = w_idx == (W - 1)       # w == W-1 -> zero fill
            shift = 1
        else:
            first_mask = lane < W              # h == 0
            last_mask = lane >= (HW - W)       # h == H-1
            shift = W

        # pltpu.roll only accepts non-negative shifts: "-shift" becomes a
        # circular roll by HW-shift with wrapped lanes masked off.  The % HW
        # guards the degenerate H==1 / W==1 cases (fully masked anyway).
        fwd_shift = shift % HW
        bwd_shift = (HW - shift) % HW
        zero = jnp.zeros((), x.dtype)

        def write_triplet(v, o_ref):
            o_ref[:, 0, :, :] = jnp.where(
                first_mask, zero, pltpu.roll(v, shift=fwd_shift, axis=2))
            o_ref[:, 1, :, :] = v
            o_ref[:, 2, :, :] = jnp.where(
                last_mask, zero, pltpu.roll(v, shift=bwd_shift, axis=2))

        write_triplet(x, ox_ref)
        write_triplet(y, oy_ref)

    return kernel


def _round_up(n, m):
    return ((n + m - 1) // m) * m


def _choose_tiling(B, C, HW, dtype, vmem_cap):
    """Pick (bb, cc): batch rows and channel rows per grid step."""
    item = jnp.dtype(dtype).itemsize
    sub = max(8, 32 // item)           # sublane tile: 8 f32 / 16 bf16 / 32 int8

    # Per-step input-block target.  Pipelined footprint ~= 16x the input block
    # (2 inputs + 2 outputs at 3x, each double-buffered):
    #   v5e/v6e (128 MiB VMEM) -> 2   MiB blocks, ~32 MiB footprint
    #   v7x     ( 64 MiB VMEM) -> 1.6 MiB blocks, ~26 MiB footprint
    budget = min(2 << 20, max(256 << 10, vmem_cap // 40))

    def in_bytes(bb, cc):
        return bb * _round_up(cc, sub) * HW * item

    cc = C
    if in_bytes(1, C) <= budget:
        # Fold batch rows, but keep >= 2 grid steps (megacore on v7x, and so
        # the next tile's load hides under the previous tile's 3x writeback).
        bb = max(1, min(B, budget // in_bytes(1, C)))
        if B >= 2:
            bb = max(1, min(bb, B // 2))
        while B % bb:
            bb -= 1
    else:
        # Whole-(C, HW) slab exceeds the budget: split the channel axis with
        # legal block sizes (multiples of 8 along the sublane dim), preferring
        # sublane-dense multiples of `sub`.
        bb = 1
        legal = [d for d in range(8, C, 8) if C % d == 0]
        fits = [d for d in legal if in_bytes(1, d) <= budget]
        dense_fits = [d for d in fits if d % sub == 0]
        if dense_fits:
            cc = max(dense_fits)
        elif fits:
            cc = max(fits)
        elif legal:
            cc = min(legal)    # bounded even if above budget
        else:
            cc = C             # no legal split; oversized block, limit raised by caller
            # TODO(synk): split H (with a 1-row halo for vertical) when even a
            # single channel row exceeds the VMEM budget.

    # If the grid would be a single step, split C anyway so both v7x cores work.
    if (B // bb) * (C // cc) < 2:
        legal = [d for d in range(8, C, 8) if C % d == 0]
        if legal:
            cc = max(legal)

    return bb, cc, sub, item


def propagation_faster(offset_x, offset_y, propagation_type="horizontal"):
    assert offset_x.shape == offset_y.shape and offset_x.dtype == offset_y.dtype
    B, C, H, W = offset_x.shape
    dtype = offset_x.dtype
    HW = H * W

    try:
        vmem_cap = int(pltpu.get_tpu_info().vmem_capacity_bytes)
    except Exception:
        vmem_cap = 64 * 1024 * 1024           # conservative: fits every generation
    vmem_cap = max(vmem_cap, 32 * 1024 * 1024)

    bb, cc, sub, item = _choose_tiling(B, C, HW, dtype, vmem_cap)
    nb, nc = B // bb, C // cc
    grid = (nb, nc)

    in_block_bytes = bb * _round_up(cc, sub) * HW * item
    out_block_bytes = 3 * in_block_bytes
    footprint = 2 * 2 * in_block_bytes + 2 * 2 * out_block_bytes  # double-buffered
    vmem_limit = min(max(48 << 20, (footprint * 3) // 2), (vmem_cap * 3) // 4)
    vmem_limit = max(vmem_limit, footprint + (4 << 20))

    horizontal = propagation_type == "horizontal"
    kernel = _make_prop_kernel(W, HW, horizontal)

    # Lane-dense views (free reshapes): fuse H*W into the lane axis; the three
    # output channel groups get their own size-3 axis.
    x3 = offset_x.reshape(B, C, HW)
    y3 = offset_y.reshape(B, C, HW)

    in_kwargs = {}
    if nb * nc >= 8:
        # Deeper input buffering smooths the asymmetric 1:3 read:write DMA
        # pattern; only worth it (and only VMEM-safe) with many grid steps.
        in_kwargs = dict(pipeline_mode=pl.Buffered(3))
    in_block = pl.BlockSpec((bb, cc, HW), lambda i, j: (i, j, 0), **in_kwargs)
    out_block = pl.BlockSpec((bb, 3, cc, HW), lambda i, j: (i, 0, j, 0))

    cost = pl.CostEstimate(
        flops=0,
        transcendentals=0,
        bytes_accessed=8 * B * C * HW * item)   # 2 blocks read, 6 written

    ox, oy = pl.pallas_call(
        kernel,
        out_shape=(
            jax.ShapeDtypeStruct((B, 3, C, HW), dtype),
            jax.ShapeDtypeStruct((B, 3, C, HW), dtype),
        ),
        grid_spec=pltpu.PrefetchScalarGridSpec(
            num_scalar_prefetch=0,
            grid=grid,
            in_specs=[in_block, in_block],
            out_specs=[out_block, out_block],
        ),
        compiler_params=pltpu.CompilerParams(
            dimension_semantics=("parallel", "parallel"),
            vmem_limit_bytes=int(vmem_limit),
        ),
        cost_estimate=cost,
    )(x3, y3)

    # Free reshapes back to NCHW: (B, 3, C, HW) -> (B, 3C, H, W).
    return ox.reshape(B, 3 * C, H, W), oy.reshape(B, 3 * C, H, W)


# ---------------- pure-JAX reference (mirrors the PyTorch code) ----------------
def _ref(offset_x, offset_y, propagation_type="horizontal"):
    B, C, H, W = offset_x.shape
    hz = jnp.zeros((B, C, H, 1), offset_x.dtype)
    vz = jnp.zeros((B, C, 1, W), offset_x.dtype)

    def one(o):
        if propagation_type == "horizontal":
            return jnp.concatenate(
                (
                    jnp.concatenate((hz, o[:, :, :, :-1]), axis=3),
                    o,
                    jnp.concatenate((o[:, :, :, 1:], hz), axis=3),
                ),
                axis=1,
            )
        else:
            return jnp.concatenate(
                (
                    jnp.concatenate((vz, o[:, :, :-1, :]), axis=2),
                    o,
                    jnp.concatenate((o[:, :, 1:, :], vz), axis=2),
                ),
                axis=1,
            )

    return one(offset_x), one(offset_y)


if __name__ == "__main__":
    key = jax.random.PRNGKey(0)
    kx, ky = jax.random.split(key)
    B, C, H, W = 2, 4, 16, 16
    offset_x = jax.random.normal(kx, (B, C, H, W), dtype=jnp.float32)
    offset_y = jax.random.normal(ky, (B, C, H, W), dtype=jnp.float32)

    ok = True
    for ptype in ("horizontal", "vertical"):
        ox, oy = propagation_faster(offset_x, offset_y, ptype)
        jax.block_until_ready(ox)
        jax.block_until_ready(oy)
        rx, ry = _ref(offset_x, offset_y, ptype)
        ok &= bool(jnp.allclose(ox, rx)) and bool(jnp.allclose(oy, ry))

    if ok:
        print("KERNEL_OK")
    else:
        raise SystemExit("mismatch vs reference")
</pallas_src>

<mosaic_0001>
module attributes {stable_mosaic.version = 11 : i64} {
  func.func @kernel(%arg0: i32, %arg1: i32, %arg2: memref<1x4x256xf32, #tpu.memory_space<vmem>>, %arg3: memref<1x4x256xf32, #tpu.memory_space<vmem>>, %arg4: memref<1x3x4x256xf32, #tpu.memory_space<vmem>>, %arg5: memref<1x3x4x256xf32, #tpu.memory_space<vmem>>) attributes {dimension_semantics = [#tpu.dimension_semantics<parallel>, #tpu.dimension_semantics<parallel>], iteration_bounds = array<i64: 2, 1>, scalar_prefetch = 0 : i64, scratch_operands = 0 : i64, tpu.core_type = #tpu.core_type<tc>, window_params = [{transform_indices = @transform_0, window_bounds = array<i64: 1, 4, 256>}, {transform_indices = @transform_1, window_bounds = array<i64: 1, 4, 256>}, {transform_indices = @transform_2, window_bounds = array<i64: 1, 3, 4, 256>}, {transform_indices = @transform_3, window_bounds = array<i64: 1, 3, 4, 256>}]} {
    %c0 = arith.constant 0 : index
    %c0_0 = arith.constant 0 : index
    %c0_1 = arith.constant 0 : index
    %0 = vector.load %arg2[%c0, %c0_0, %c0_1] : memref<1x4x256xf32, #tpu.memory_space<vmem>>, vector<1x4x256xf32>
    %c0_2 = arith.constant 0 : index
    %c0_3 = arith.constant 0 : index
    %c0_4 = arith.constant 0 : index
    %1 = vector.load %arg3[%c0_2, %c0_3, %c0_4] : memref<1x4x256xf32, #tpu.memory_space<vmem>>, vector<1x4x256xf32>
    %2 = tpu.iota {dimensions = array<i32: 2>} : vector<1x1x256xi32>
    %c15_i32 = arith.constant 15 : i32
    %3 = vector.broadcast %c15_i32 : i32 to vector<1x1x256xi32>
    %4 = arith.andi %2, %3 : vector<1x1x256xi32>
    %c0_i32 = arith.constant 0 : i32
    %5 = vector.broadcast %c0_i32 : i32 to vector<1x1x256xi32>
    %6 = arith.cmpi eq, %4, %5 : vector<1x1x256xi32>
    %c15_i32_5 = arith.constant 15 : i32
    %7 = vector.broadcast %c15_i32_5 : i32 to vector<1x1x256xi32>
    %8 = arith.cmpi eq, %4, %7 : vector<1x1x256xi32>
    %c1_i32 = arith.constant 1 : i32
    %9 = tpu.dynamic_rotate %0 by %c1_i32 dim 2 : vector<1x4x256xf32>, i32 -> vector<1x4x256xf32>
    %cst = arith.constant 0.000000e+00 : f32
    %10 = vector.shape_cast %6 : vector<1x1x256xi1> to vector<1x1x256xi1>
    %11 = vector.broadcast %10 : vector<1x1x256xi1> to vector<1x4x256xi1>
    %12 = vector.broadcast %cst : f32 to vector<1x4x256xf32>
    %13 = arith.select %11, %12, %9 : vector<1x4x256xi1>, vector<1x4x256xf32>
    %c0_6 = arith.constant 0 : index
    %c0_7 = arith.constant 0 : index
    %c0_8 = arith.constant 0 : index
    %c0_9 = arith.constant 0 : index
    %14 = vector.load %arg4[%c0_6, %c0_7, %c0_8, %c0_9] : memref<1x3x4x256xf32, #tpu.memory_space<vmem>>, vector<1x1x4x256xf32>
    %15 = vector.shape_cast %14 : vector<1x1x4x256xf32> to vector<1x4x256xf32>
    %16 = vector.shape_cast %13 : vector<1x4x256xf32> to vector<1x1x4x256xf32>
    tpu.vector_store %arg4[%c0_6, %c0_7, %c0_8, %c0_9], %16 {strides = array<i32>} : memref<1x3x4x256xf32, #tpu.memory_space<vmem>>, vector<1x1x4x256xf32>,
    %c0_10 = arith.constant 0 : index
    %c1 = arith.constant 1 : index
    %c0_11 = arith.constant 0 : index
    %c0_12 = arith.constant 0 : index
    %17 = vector.load %arg4[%c0_10, %c1, %c0_11, %c0_12] : memref<1x3x4x256xf32, #tpu.memory_space<vmem>>, vector<1x1x4x256xf32>
    %18 = vector.shape_cast %17 : vector<1x1x4x256xf32> to vector<1x4x256xf32>
    %19 = vector.shape_cast %0 : vector<1x4x256xf32> to vector<1x1x4x256xf32>
    tpu.vector_store %arg4[%c0_10, %c1, %c0_11, %c0_12], %19 {strides = array<i32>} : memref<1x3x4x256xf32, #tpu.memory_space<vmem>>, vector<1x1x4x256xf32>,
    %c255_i32 = arith.constant 255 : i32
    %20 = tpu.dynamic_rotate %0 by %c255_i32 dim 2 : vector<1x4x256xf32>, i32 -> vector<1x4x256xf32>
    %cst_13 = arith.constant 0.000000e+00 : f32
    %21 = vector.shape_cast %8 : vector<1x1x256xi1> to vector<1x1x256xi1>
    %22 = vector.broadcast %21 : vector<1x1x256xi1> to vector<1x4x256xi1>
    %23 = vector.broadcast %cst_13 : f32 to vector<1x4x256xf32>
    %24 = arith.select %22, %23, %20 : vector<1x4x256xi1>, vector<1x4x256xf32>
    %c0_14 = arith.constant 0 : index
    %c2 = arith.constant 2 : index
    %c0_15 = arith.constant 0 : index
    %c0_16 = arith.constant 0 : index
    %25 = vector.load %arg4[%c0_14, %c2, %c0_15, %c0_16] : memref<1x3x4x256xf32, #tpu.memory_space<vmem>>, vector<1x1x4x256xf32>
    %26 = vector.shape_cast %25 : vector<1x1x4x256xf32> to vector<1x4x256xf32>
    %27 = vector.shape_cast %24 : vector<1x4x256xf32> to vector<1x1x4x256xf32>
    tpu.vector_store %arg4[%c0_14, %c2, %c0_15, %c0_16], %27 {strides = array<i32>} : memref<1x3x4x256xf32, #tpu.memory_space<vmem>>, vector<1x1x4x256xf32>,
    %c1_i32_17 = arith.constant 1 : i32
    %28 = tpu.dynamic_rotate %1 by %c1_i32_17 dim 2 : vector<1x4x256xf32>, i32 -> vector<1x4x256xf32>
    %cst_18 = arith.constant 0.000000e+00 : f32
    %29 = vector.shape_cast %6 : vector<1x1x256xi1> to vector<1x1x256xi1>
    %30 = vector.broadcast %29 : vector<1x1x256xi1> to vector<1x4x256xi1>
    %31 = vector.broadcast %cst_18 : f32 to vector<1x4x256xf32>
    %32 = arith.select %30, %31, %28 : vector<1x4x256xi1>, vector<1x4x256xf32>
    %c0_19 = arith.constant 0 : index
    %c0_20 = arith.constant 0 : index
    %c0_21 = arith.constant 0 : index
    %c0_22 = arith.constant 0 : index
    %33 = vector.load %arg5[%c0_19, %c0_20, %c0_21, %c0_22] : memref<1x3x4x256xf32, #tpu.memory_space<vmem>>, vector<1x1x4x256xf32>
    %34 = vector.shape_cast %33 : vector<1x1x4x256xf32> to vector<1x4x256xf32>
    %35 = vector.shape_cast %32 : vector<1x4x256xf32> to vector<1x1x4x256xf32>
    tpu.vector_store %arg5[%c0_19, %c0_20, %c0_21, %c0_22], %35 {strides = array<i32>} : memref<1x3x4x256xf32, #tpu.memory_space<vmem>>, vector<1x1x4x256xf32>,
    %c0_23 = arith.constant 0 : index
    %c1_24 = arith.constant 1 : index
    %c0_25 = arith.constant 0 : index
    %c0_26 = arith.constant 0 : index
    %36 = vector.load %arg5[%c0_23, %c1_24, %c0_25, %c0_26] : memref<1x3x4x256xf32, #tpu.memory_space<vmem>>, vector<1x1x4x256xf32>
    %37 = vector.shape_cast %36 : vector<1x1x4x256xf32> to vector<1x4x256xf32>
    %38 = vector.shape_cast %1 : vector<1x4x256xf32> to vector<1x1x4x256xf32>
    tpu.vector_store %arg5[%c0_23, %c1_24, %c0_25, %c0_26], %38 {strides = array<i32>} : memref<1x3x4x256xf32, #tpu.memory_space<vmem>>, vector<1x1x4x256xf32>,
    %c255_i32_27 = arith.constant 255 : i32
    %39 = tpu.dynamic_rotate %1 by %c255_i32_27 dim 2 : vector<1x4x256xf32>, i32 -> vector<1x4x256xf32>
    %cst_28 = arith.constant 0.000000e+00 : f32
    %40 = vector.shape_cast %8 : vector<1x1x256xi1> to vector<1x1x256xi1>
    %41 = vector.broadcast %40 : vector<1x1x256xi1> to vector<1x4x256xi1>
    %42 = vector.broadcast %cst_28 : f32 to vector<1x4x256xf32>
    %43 = arith.select %41, %42, %39 : vector<1x4x256xi1>, vector<1x4x256xf32>
    %c0_29 = arith.constant 0 : index
    %c2_30 = arith.constant 2 : index
    %c0_31 = arith.constant 0 : index
    %c0_32 = arith.constant 0 : index
    %44 = vector.load %arg5[%c0_29, %c2_30, %c0_31, %c0_32] : memref<1x3x4x256xf32, #tpu.memory_space<vmem>>, vector<1x1x4x256xf32>
    %45 = vector.shape_cast %44 : vector<1x1x4x256xf32> to vector<1x4x256xf32>
    %46 = vector.shape_cast %43 : vector<1x4x256xf32> to vector<1x1x4x256xf32>
    tpu.vector_store %arg5[%c0_29, %c2_30, %c0_31, %c0_32], %46 {strides = array<i32>} : memref<1x3x4x256xf32, #tpu.memory_space<vmem>>, vector<1x1x4x256xf32>,
    return
  }
  func.func @transform_0(%arg0: i32, %arg1: i32) -> (i32, i32, i32) {
    %c0_i32 = arith.constant 0 : i32
    %c0_i32_0 = arith.constant 0 : i32
    return %arg0, %arg1, %c0_i32 : i32, i32, i32
  }
  func.func @transform_1(%arg0: i32, %arg1: i32) -> (i32, i32, i32) {
    %c0_i32 = arith.constant 0 : i32
    %c0_i32_0 = arith.constant 0 : i32
    return %arg0, %arg1, %c0_i32 : i32, i32, i32
  }
  func.func @transform_2(%arg0: i32, %arg1: i32) -> (i32, i32, i32, i32) {
    %c0_i32 = arith.constant 0 : i32
    %c0_i32_0 = arith.constant 0 : i32
    %c0_i32_1 = arith.constant 0 : i32
    return %arg0, %c0_i32, %arg1, %c0_i32_0 : i32, i32, i32, i32
  }
  func.func @transform_3(%arg0: i32, %arg1: i32) -> (i32, i32, i32, i32) {
    %c0_i32 = arith.constant 0 : i32
    %c0_i32_0 = arith.constant 0 : i32
    %c0_i32_1 = arith.constant 0 : i32
    return %arg0, %c0_i32, %arg1, %c0_i32_0 : i32, i32, i32, i32
  }
}

</mosaic_0001>

<bundles_post_ra>
// kernel: tpu_custom_call.1
= control target key start
LH: loop header
LB: loop body
LE: loop exit
PB: predicated region body
PF: predicated region fallthrough
CT: control target
= control target key end

     0   :  { %9 = vsyncpa [#allocation3], 0  ;;  %s1070_s0 = inlined_call_operand.hbm [shape: f32[2,4,256], index: 0, kind: input, shape index: {}]   ;;  %s1071_s1 = inlined_call_operand.hbm [shape: f32[2,4,256], index: 1, kind: input, shape index: {}]   ;;  %s1072_s2 = inlined_call_operand.hbm [shape: f32[2,3,4,256], index: 2, kind: output, shape index: {0}]   ;;  %s1073_s3 = inlined_call_operand.hbm [shape: f32[2,3,4,256], index: 3, kind: output, shape index: {1}]  }
   0x1   :  { %11 = vsyncpa [#allocation3 + $0x1], 0 }
   0x2   :  { %12 = vsyncpa [#allocation6], 0 }
   0x3   :  { %14 = vsyncpa [#allocation6 + $0x1], 0 }
   0x4   :  { %15 = vsyncpa [#allocation4], 0 }
   0x5   :  { %17 = vsyncpa [#allocation4 + $0x1], 0 }
   0x6   :  { %18 = vsyncpa [#allocation9], 0 }
   0x7   :  { %20 = vsyncpa [#allocation9 + $0x1], 0  ;;  %s867_s12 = smov 0   ;;  %s869_s13 = smov 0  }
   0x8   :  { %s871_s14 = smov 0   ;;  %s873_s15 = smov 0  }
   0x9   :  { %s875_s16 = smov 0   ;;  %s877_s17 = smov 0  }
   0xa LB: > { %s561_s18 = sadd.s32 4294967295, %s841_s17   ;;  %s562_s19 = sadd.s32 4294967294, %s841_s17   ;;  %s841_s17 = sphi %s877_s17, %s26_s17   ;;  %s837_s16 = sphi %s875_s16, %s1088_s16   ;;  %s833_s15 = sphi %s873_s15, %s1087_s15   ;;  %s829_s14 = sphi %s871_s14, %s1086_s14   ;;  %s825_s13 = sphi %s869_s13, %s1085_s13   ;;  %s821_s12 = sphi %s867_s12, %s1084_s12  }
   0xb   : > { %s38_s20 = sadd.s32 1, %s837_s16  ;;  %s47_s21 = sadd.s32 1, %s829_s14 }
   0xc   : > { %p40_p0 = scmp.ge.s32.totalorder %s38_s20, 2  ;;  %p54_p1 = scmp.ne.s32.totalorder %s829_s14, %s825_s13 }
   0xd   : > { %p55_p2 = scmp.eq.s32.totalorder %s841_s17, 0  ;;  %p60_p3 = scmp.ne.s32.totalorder %s825_s13, %s821_s12 }
   0xe   : > { %s1090_s20 = smov (%p40_p0, %s38_s20), 0  ;;  %p61_p5 = scmp.eq.s32.totalorder %s561_s18, 0 }
   0xf   : > { %p908_p4 = por %p55_p2, %p54_p1  ;;  %s42_s23 = ssub.s32 %s837_s16, %s1090_s20 }
  0x10   : > { %p114_p6 = scmp.eq.s32.totalorder %s561_s18, 1  ;;  %p45_p7 = scmp.eq.s32.totalorder %s42_s23, 0 }
  0x11   : > { %p914_p8 = por %p61_p5, %p60_p3  ;;  %p120_p10 = scmp.eq.s32.totalorder %s562_s19, 1 }
  0x12   : > { %p918_p9 = por %p114_p6, %p54_p1  ;;  %p564_p12 = scmp.ge.s32.totalorder %s841_s17, 2 }
  0x13   : > { %s923_s26 = scalar_select %p45_p7, %s829_s14, %s47_s21  }
  0x14   : > { %p925_p11 = por %p120_p10, %p60_p3  ;;  %p609_p13 = scmp.lt.s32.totalorder %s841_s17, 2 }
  0x15   : > { %s168_s28 = sand.u32 1, %s829_s14   ;;  %s582_s30 = sshll.u32 %s837_s16, 3 }
  0x16   : > { %s565_s29 = sshll.u32 %s168_s28, 3  ;;  %s179_s6 = scalar_lea.hbm %s1070_s0, %s582_s30 }
  0x17   : > { %s172_s7 = scalar_lea.vmem [#allocation2], %s565_s29  ;;  %s181_s9 = sshll.u32 %s179_s6, 4  ;;  %s182_s9 = int_to_ptr.hbm [resolvable:$true] %s181_s9 }
  0x18   : > { %s183_s8 = sshll.u32 %s172_s7, 4  ;;  %p596_p0 = pnand %p609_p13, %p908_p4  ;;  %s184_s8 = int_to_ptr.vmem [resolvable:$true] %s183_s8 }
  0x19   : > { %p571_p1 = scmp.ge.s32.totalorder %s841_s17, 1  ;;  %p210_p2 = scmp.lt.s32.totalorder %s841_s17, 3 }
  0x1a   : > { %s169_s10 = scalar_lea.sflag [#allocation3], %s168_s28  ;;  %s201_s19 = scalar_lea.hbm %s1071_s1, %s582_s30 }
  0x1b   : > { %598 = dma.hbm_to_vmem [thread:$0]  (!%p596_p0), %s182_s9, 128, %s184_s8, %s169_s10  }
  0x1c   : > { %p211_p3 = pnand %p571_p1, %p210_p2  ;;  %s194_s21 = scalar_lea.vmem [#allocation5], %s565_s29 }
  0x1d   : > { %s205_s23 = sshll.u32 %s194_s21, 4  ;;  %s203_s4 = sshll.u32 %s201_s19, 4  ;;  %s206_s23 = int_to_ptr.vmem [resolvable:$true] %s205_s23  ;;  %s204_s4 = int_to_ptr.hbm [resolvable:$true] %s203_s4 }
  0x1e   : > { %s191_s5 = scalar_lea.sflag [#allocation6], %s168_s28  ;;  %214 = sbr.rel (%p211_p3) target bundleno = 200 (0xc8), region = 28 }
  0x1f   : > { %601 = dma.hbm_to_vmem [thread:$0]  (!%p596_p0), %s204_s4, 128, %s206_s23, %s191_s5  }
  0x20   : > { %s944_s22 = sand.u32 (!%p211_p3), 1, %s825_s13  }
  0x21   : > { %s572_s6 = sshll.u32 (!%p211_p3), %s944_s22, 3  ;;  %s217_s7 = scalar_lea.sflag (!%p211_p3), [#allocation3], %s944_s22 }
  0x22   : > { %s220_s8 = scalar_lea.vmem (!%p211_p3), [#allocation2], %s572_s6 }
  0x23   : > { %804 = dma.done.wait (%p914_p8), %s217_s7, 128  }
  0x24   : > { %806 = vsyncadd (%p914_p8), %s217_s7, 4294967168  ;;  %s227_s29 = scalar_lea.sflag [#allocation6], %s944_s22  ;;  %s230_s28 = scalar_lea.vmem [#allocation5], %s572_s6 }
  0x25   : > { %808 = dma.done.wait (%p914_p8), %s227_s29, 128  }
  0x26   : > { %810 = vsyncadd (%p914_p8), %s227_s29, 4294967168  ;;  %s584_s30 = smul.u32 24, %s944_s22  ;;  %v264_v0 = vld [vmem:[%s220_s8] sm:$0xff]  ;;  %s843_s10 = smov 1   ;;  %v265_v3 = vld [vmem:[%s230_s28] sm:$0xff]  ;;  %v266_v10 = vlaneseq  ;;  %vm297_vm3 = vcmask 1043456  }
  0x27   : > { %276 = vst [vmem:[#allocation1] ss:$2 sm:$0xff] %v264_v0  ;;  %s844_s24 = smov 127   ;;  %s585_s18 = smul.u32 24, %s833_s15 }
  0x28   : > { %s958_s9 = scalar_lea.vmem [#allocation7], %s584_s30  ;;  %s961_s11 = scalar_lea.vmem [#allocation8], %s584_s30  ;;  %v964_v11 = vand.u32 127, %v266_v10 }
  0x29   : > { %574 = vst [vmem:[%s958_s9 + $0x8] sm:$0xff] %v264_v0  ;;  %s389_s23 = scalar_lea.hbm %s1072_s2, %s585_s18  ;;  %s390_s4 = sshll.u32 %s958_s9, 4  ;;  %s391_s4 = int_to_ptr.vmem [resolvable:$true] %s390_s4 }
  0x2a   : > { %576 = vst [vmem:[%s961_s11 + $0x8] sm:$0xff] %v265_v3  ;;  %v268_v13 = vadd.s32 128, %v964_v11  ;;  %v269_v14 = vand.u32 15, %v964_v11  ;;  %vm285_vm0 = vcmp.lt.s32.totalorder %v964_v11, 1  ;;  %vm312_vm4 = vcmp.lt.s32.totalorder %v964_v11, 127  ;;  %s392_s15 = sshll.u32 %s389_s23, 4  ;;  %s408_s7 = scalar_lea.hbm %s1073_s3, %s585_s18  ;;  %s393_s15 = int_to_ptr.hbm [resolvable:$true] %s392_s15 }
  0x2b   : > { %s371_s8 = scalar_lea.sflag [#allocation4], %s944_s22  ;;  %s737_s29 = sshra.s32 %s393_s15, 4  ;;  %s738_s29 = int_to_ptr.hbm [resolvable:$true] %s737_s29 }
  0x2c   : > { %v270_v15 = vand.u32 15, %v268_v13  ;;  %vm969_vm1 = vcmp.eq.s32.totalorder %v269_v14, 0  ;;  %vm991_vm6 = vcmp.eq.s32.totalorder %v269_v14, 15  ;;  %s739_s28 = scalar_lea.hbm %s738_s29, 24  ;;  %p744_p7 = scmp.lt.s32.totalorder %s738_s29, %s1072_s2 }
  0x2d   : > { %p740_p4 = scmp.ne.s32.totalorder %s738_s29, %s739_s28 }
  0x2e   : > { %v277_v1 = vld.sshfl [vmem:[#allocation1] sm:$0xff pattern:$0x75316420]  ;;  %v278_v2 = vld.sshfl [vmem:[#allocation1 + $0x8] sm:$0xff pattern:$0x75316420] }
  0x2f   : > { %281 = vrot.lane.b32.xlu0 %v277_v1, %s843_s10  ;;  %303 = vst [vmem:[#allocation1] ss:$2 sm:$0xff] %v264_v0  ;;  %vm272_vm2 = vcmp.eq.s32.totalorder %v270_v15, 0  ;;  %vm987_vm5 = vcmp.eq.s32.totalorder %v270_v15, 15  ;;  %p741_p5 = pnand %p740_p4, %p918_p9 }
  0x31   : > { %p742_p6 = pneg %p741_p5 }
  0x36   : > { %v304_v4 = vld.sshfl [vmem:[#allocation1] sm:$0xff pattern:$0x75316420]  ;;  %v305_v5 = vld.sshfl [vmem:[#allocation1 + $0x8] sm:$0xff pattern:$0x75316420] }
  0x37   : > { %283 = vrot.lane.b32.xlu0 %v278_v2, %s843_s10  ;;  %308 = vrot.lane.b32.xlu1 %v304_v4, %s844_s24  ;;  %329 = vst [vmem:[#allocation1] ss:$2 sm:$0xff] %v265_v3 }
  0x3e   : > { %v330_v6 = vld.sshfl [vmem:[#allocation1] sm:$0xff pattern:$0x75316420]  ;;  %v331_v7 = vld.sshfl [vmem:[#allocation1 + $0x8] sm:$0xff pattern:$0x75316420] }
  0x3f   : > { %310 = vrot.lane.b32.xlu1 %v305_v5, %s844_s24  ;;  %350 = vst [vmem:[#allocation1] ss:$2 sm:$0xff] %v265_v3  ;;  %334 = vrot.lane.b32.xlu2 %v330_v6, %s843_s10 }
  0x46   : > { %v352_v8 = vld.sshfl [vmem:[#allocation1 + $0x8] sm:$0xff pattern:$0x75316420]  ;;  %v351_v9 = vld.sshfl [vmem:[#allocation1] sm:$0xff pattern:$0x75316420] }
  0x47   : > { %357 = vrot.lane.b32.xlu1 %v352_v8, %s844_s24  ;;  %355 = vrot.lane.b32.xlu0 %v351_v9, %s844_s24  ;;  %s743_s24 = scalar_lea.hbm %s1072_s2, 48 }
  0x48   : > { %336 = vrot.lane.b32.xlu2 %v331_v7, %s843_s10  ;;  %p745_p8 = scmp.lt.s32.totalorder %s743_s24, %s739_s28 }
  0x4a   : > { %p746_p10 = por %p745_p8, %p744_p7 }
  0x4c   : > { %p747_p13 = pnand %p746_p10, %p742_p6 }
  0x99   : > { %v335_v12 = vpop.permute.xlu2 %334 }
  0xa1   : > { %v282_v16 = vpop.permute.xlu0 %281 }
  0xa2   : > { %v337_v17 = vpop.permute.xlu2 %336 }
  0xa3   : > { %v338_v19 = vsel %vm285_vm0, %v335_v12, %v337_v17  ;;  %v339_v20 = vsel %vm285_vm0, %v337_v17, %v335_v12 }
  0xa4   : > { %v340_v21 = vsel %vm969_vm1, 0.0, %v339_v20  ;;  %v341_v22 = vsel %vm272_vm2, 0.0, %v338_v19 }
  0xa5   : > { %v344_v23 = vrot.slane %v341_v22, 4 }
  0xa7   : > { %v345_v24 = vsel %vm297_vm3, %v340_v21, %v344_v23 }
  0xa8   : > { %347 = vst [vmem:[%s961_s11] sm:$0xff] %v345_v24 }
  0xa9   : > { %v284_v25 = vpop.permute.xlu0 %283  ;;  %v309_v26 = vpop.permute.xlu1 %308 }
  0xaa   : > { %v286_v27 = vsel %vm285_vm0, %v282_v16, %v284_v25  ;;  %v287_v28 = vsel %vm285_vm0, %v284_v25, %v282_v16 }
  0xab   : > { %v293_v29 = vsel %vm272_vm2, 0.0, %v286_v27  ;;  %v292_v31 = vsel %vm969_vm1, 0.0, %v287_v28 }
  0xac   : > { %v296_v30 = vrot.slane %v293_v29, 4 }
  0xae   : > { %v298_v32 = vsel %vm297_vm3, %v292_v31, %v296_v30 }
  0xaf   : > { %300 = vst [vmem:[%s958_s9] sm:$0xff] %v298_v32 }
  0xb1   : > { %v311_v34 = vpop.permute.xlu1 %310 }
  0xb2   : > { %v313_v36 = vsel %vm312_vm4, %v309_v26, %v311_v34  ;;  %v314_v37 = vsel %vm312_vm4, %v311_v34, %v309_v26 }
  0xb3   : > { %v320_v38 = vsel %vm987_vm5, 0.0, %v314_v37  ;;  %v319_v40 = vsel %vm991_vm6, 0.0, %v313_v36 }
  0xb4   : > { %v323_v39 = vrot.slane %v320_v38, 4 }
  0xb6   : > { %v324_v41 = vsel %vm297_vm3, %v319_v40, %v323_v39 }
  0xb7   : > { %575 = vst [vmem:[%s958_s9 + $0x10] sm:$0xff] %v324_v41 }
  0xb8   : > { %750 = shalt.err (!%p747_p13)
}
  0xb9   : > { %s845_s9 = smov 128   ;;  %s846_s18 = smov 8   ;;  %v358_v42 = vpop.permute.xlu1 %357  ;;  %v356_v43 = vpop.permute.xlu0 %355 }
  0xba   : > { %591 = dma.vmem_to_hbm [thread:$0]  (%p918_p9), %s391_s4, 384, %s393_s15, %s371_s8, %s845_s9, %s845_s9, %s846_s18   ;;  %v359_v44 = vsel %vm312_vm4, %v356_v43, %v358_v42  ;;  %v360_v45 = vsel %vm312_vm4, %v358_v42, %v356_v43 }
  0xbb   : > { %s409_s23 = sshll.u32 %s961_s11, 4  ;;  %s411_s5 = sshll.u32 %s408_s7, 4  ;;  %v362_v46 = vsel %vm987_vm5, 0.0, %v360_v45  ;;  %v361_v48 = vsel %vm991_vm6, 0.0, %v359_v44  ;;  %s410_s23 = int_to_ptr.vmem [resolvable:$true] %s409_s23  ;;  %s412_s5 = int_to_ptr.hbm [resolvable:$true] %s411_s5 }
  0xbc   : > { %v365_v47 = vrot.slane %v362_v46, 4  ;;  %s376_s4 = scalar_lea.sflag [#allocation9], %s944_s22  ;;  %s765_s15 = sshra.s32 %s412_s5, 4  ;;  %s766_s15 = int_to_ptr.hbm [resolvable:$true] %s765_s15 }
  0xbd   : > { %s767_s6 = scalar_lea.hbm %s766_s15, 24  ;;  %s771_s29 = scalar_lea.hbm %s1073_s3, 48 }
  0xbe   : > { %v366_v49 = vsel %vm297_vm3, %v361_v48, %v365_v47  ;;  %p768_p0 = scmp.ne.s32.totalorder %s766_s15, %s767_s6  ;;  %p772_p3 = scmp.lt.s32.totalorder %s766_s15, %s1073_s3 }
  0xbf   : > { %577 = vst [vmem:[%s961_s11 + $0x10] sm:$0xff] %v366_v49  ;;  %p773_p4 = scmp.lt.s32.totalorder %s771_s29, %s767_s6 }
  0xc0   : > { %p769_p1 = pnand %p768_p0, %p918_p9 }
  0xc1   : > { %p774_p5 = por %p773_p4, %p772_p3 }
  0xc2   : > { %p770_p2 = pneg %p769_p1 }
  0xc4   : > { %p775_p6 = pnand %p774_p5, %p770_p2 }
  0xc6   : > { %778 = shalt.err (!%p775_p6)
}
  0xc7   : > { %592 = dma.vmem_to_hbm [thread:$0]  (%p918_p9), %s410_s23, 384, %s412_s5, %s376_s4, %s845_s9, %s845_s9, %s846_s18  }
  0xc8 PF: > { %s426_s22 = sand.u32 1, %s821_s12   ;;  %p603_p7 = pnand %p564_p12, %p925_p11 }
  0xc9   : > { %s427_s11 = scalar_lea.sflag [#allocation4], %s426_s22 }
  0xca   : > { %p604_p8 = pneg %p603_p7 }
  0xcc   : > { %812 = dma.done.wait (%p604_p8), %s427_s11, 384  }
  0xcd   : > { %814 = vsyncadd (%p604_p8), %s427_s11, 4294966912  ;;  %s437_s10 = scalar_lea.sflag [#allocation9], %s426_s22 }
  0xce   : > { %816 = dma.done.wait (%p604_p8), %s437_s10, 384  }
  0xcf   : > { %818 = vsyncadd (%p604_p8), %s437_s10, 4294966912  ;;  %s26_s17 = sadd.s32 1, %s841_s17   ;;  %s1084_s12 = smov %s825_s13 }
  0xd0   : > { %p23_p10 = scmp.ge.s32.totalorder %s26_s17, 4   ;;  %s1085_s13 = smov %s829_s14 }
  0xd1   : > { %s1086_s14 = smov %s923_s26  ;;  %s1087_s15 = smov %s837_s16 }
  0xd2   : > { %s1088_s16 = smov %s1090_s20  ;;  %25 = sbr.rel (!%p23_p10) target bundleno = 10 (0xa), region = 107 }
  0xd7   :  { %443 = vsyncpa [#allocation3], 1 }
  0xd8   :  { %445 = vsyncpa [#allocation3 + $0x1], 1 }
  0xd9   :  { %446 = vsyncpa [#allocation6], 1 }
  0xda   :  { %448 = vsyncpa [#allocation6 + $0x1], 1 }
  0xdb   :  { %449 = vsyncpa [#allocation4], 1 }
  0xdc   :  { %451 = vsyncpa [#allocation4 + $0x1], 1 }
  0xdd   :  { %452 = vsyncpa [#allocation9], 1 }
  0xde   :  { %454 = vsyncpa [#allocation9 + $0x1], 1 }

</bundles_post_ra>
